<compile_context>
chip_gen: v7x
topology: tpu7x:2x2x1
jax: 0.10.0
libtpu: 0.0.40
codegen_flags: <defaults>
</compile_context>

<pallas_src>
import functools

import jax
import jax.numpy as jnp
from jax.experimental import pallas as pl
from jax.experimental.pallas import tpu as pltpu

# Offset.__VALUES__ = [[[0.0, 0.15, 0.025]]]
_OFFSET_XYZ = (0.0, 0.15, 0.025)

_LANES = 384                 # 3 * 128 -> lane-dense and xyz-periodic
_MAX_TILE_ROWS = 1024        # 1024 x 384 f32 block ~= 1.5 MiB per buffer
_SMALL_THRESHOLD = 4096      # below this many elements, plain JAX is faster


def _round_up(x: int, m: int) -> int:
    return ((x + m - 1) // m) * m


def _offset_kernel(pts_ref, out_ref, *, o0, o1, o2):
    """out = pts + repeating [o0, o1, o2] pattern along the lane axis."""
    lanes = out_ref.shape[-1]
    lane = jax.lax.broadcasted_iota(jnp.int32, (1, lanes), dimension=1)
    r = lane % 3
    off = jnp.where(r == 0, o0, jnp.where(r == 1, o1, o2)).astype(out_ref.dtype)
    out_ref[...] = pts_ref[...] + off


def _apply_offset(points: jax.Array, sign: float) -> jax.Array:
    """points: (..., 3) array. Returns points + sign * offset."""
    orig_shape = points.shape
    assert orig_shape[-1] == 3, "last dim must be xyz (3)"
    dtype = points.dtype
    signed = tuple(sign * v for v in _OFFSET_XYZ)

    total = points.size
    if total <= _SMALL_THRESHOLD:
        # Tiny input: a bare fused XLA add beats any custom-call launch.
        return points + jnp.asarray(signed, dtype=dtype)

    # Sublane packing requirement for the second-to-last block dim.
    itemsize = jnp.dtype(dtype).itemsize
    pack = max(8, 32 // itemsize)          # 8 (f32) / 16 (bf16) / 32 (int8)

    rows = pl.cdiv(total, _LANES)
    # Aim for >= 2 grid steps (v7x has 2 TensorCores) while capping block size.
    tile_m = min(_MAX_TILE_ROWS, _round_up(pl.cdiv(rows, 2), pack))
    tile_m = max(tile_m, pack)
    rows_padded = _round_up(rows, tile_m)
    padded_total = rows_padded * _LANES

    flat = points.reshape(-1)
    if padded_total != total:
        flat = jnp.pad(flat, (0, padded_total - total))
    tiles = flat.reshape(rows_padded, _LANES)

    grid = (rows_padded // tile_m,)
    out = pl.pallas_call(
        functools.partial(_offset_kernel, o0=signed[0], o1=signed[1], o2=signed[2]),
        out_shape=jax.ShapeDtypeStruct((rows_padded, _LANES), dtype),
        grid_spec=pltpu.PrefetchScalarGridSpec(
            num_scalar_prefetch=0,
            grid=grid,
            in_specs=[pl.BlockSpec((tile_m, _LANES), lambda i: (i, 0))],
            out_specs=pl.BlockSpec((tile_m, _LANES), lambda i: (i, 0)),
        ),
        compiler_params=pltpu.CompilerParams(
            dimension_semantics=("parallel",),
            vmem_limit_bytes=64 << 20,
        ),
    )(tiles)

    return out.reshape(-1)[:total].reshape(orig_shape)


def offset_forward(smplx_points=None, star_points=None):
    """Mirrors Offset.forward semantics.

    - smplx_points is not None: return smplx_points + offset
    - star_points  is not None: return star_points  - offset
    The (1,1,3) vs squeezed (3,) broadcast are numerically identical for
    (..., 3) inputs, so one flattened lane-dense kernel covers both branches.
    """
    if smplx_points is not None:
        return _apply_offset(smplx_points, sign=1.0)
    if star_points is not None:
        return _apply_offset(star_points, sign=-1.0)
    return None


if __name__ == "__main__":
    key = jax.random.PRNGKey(0)
    k1, k2, k3 = jax.random.split(key, 3)

    # Pallas path, 3-D case (batched SMPL-X-sized point clouds): (B, V, 3)
    smplx_points = jax.random.normal(k1, (2, 10475, 3), dtype=jnp.float32)
    # Pallas path, 2-D case (single point cloud): (V, 3)
    star_points = jax.random.normal(k2, (10475, 3), dtype=jnp.float32)
    # Small-input fast path (plain JAX): (8, 3)
    small_points = jax.random.normal(k3, (8, 3), dtype=jnp.float32)

    out_add = offset_forward(smplx_points=smplx_points)
    out_sub = offset_forward(star_points=star_points)
    out_small = offset_forward(star_points=small_points)
    jax.block_until_ready((out_add, out_sub, out_small))

    # Reference checks (plain JAX, matching PyTorch broadcasting semantics).
    off3 = jnp.asarray(_OFFSET_XYZ, dtype=jnp.float32)
    ref_add = smplx_points + off3.reshape(1, 1, 3)   # (1,1,3) broadcast
    ref_sub = star_points - off3                     # squeezed (3,) broadcast
    ref_small = small_points - off3

    assert out_add.shape == smplx_points.shape
    assert out_sub.shape == star_points.shape
    assert out_small.shape == small_points.shape
    assert jnp.allclose(out_add, ref_add, atol=1e-6)
    assert jnp.allclose(out_sub, ref_sub, atol=1e-6)
    assert jnp.allclose(out_small, ref_small, atol=1e-6)

    print("KERNEL_OK")
</pallas_src>

<mosaic_0001>
module attributes {stable_mosaic.version = 11 : i64} {
  func.func @_offset_kernel(%arg0: i32, %arg1: memref<88x384xf32, #tpu.memory_space<vmem>>, %arg2: memref<88x384xf32, #tpu.memory_space<vmem>>) attributes {dimension_semantics = [#tpu.dimension_semantics<parallel>], iteration_bounds = array<i64: 2>, scalar_prefetch = 0 : i64, scratch_operands = 0 : i64, tpu.core_type = #tpu.core_type<tc>, window_params = [{transform_indices = @transform_0, window_bounds = array<i64: 88, 384>}, {transform_indices = @transform_1, window_bounds = array<i64: 88, 384>}]} {
    %0 = tpu.iota {dimensions = array<i32: 1>} : vector<1x384xi32>
    %c3_i32 = arith.constant 3 : i32
    %c0_i32 = arith.constant 0 : i32
    %1 = arith.cmpi eq, %c3_i32, %c0_i32 : i32
    %c1_i32 = arith.constant 1 : i32
    %2 = arith.select %1, %c1_i32, %c3_i32 : i32
    %3 = vector.broadcast %2 : i32 to vector<1x384xi32>
    %4 = arith.remsi %0, %3 : vector<1x384xi32>
    %c0_i32_0 = arith.constant 0 : i32
    %5 = vector.broadcast %c0_i32_0 : i32 to vector<1x384xi32>
    %6 = arith.cmpi ne, %4, %5 : vector<1x384xi32>
    %c0_i32_1 = arith.constant 0 : i32
    %7 = vector.broadcast %c0_i32_1 : i32 to vector<1x384xi32>
    %8 = arith.cmpi slt, %4, %7 : vector<1x384xi32>
    %c0_i32_2 = arith.constant 0 : i32
    %9 = arith.cmpi slt, %2, %c0_i32_2 : i32
    %10 = vector.broadcast %9 : i1 to vector<1x384xi1>
    %11 = vector.broadcast %10 : vector<1x384xi1> to vector<1x384xi1>
    %12 = arith.xori %8, %11 : vector<1x384xi1>
    %13 = arith.andi %12, %6 : vector<1x384xi1>
    %14 = vector.broadcast %2 : i32 to vector<1x384xi32>
    %15 = arith.addi %4, %14 : vector<1x384xi32>
    %16 = arith.select %13, %15, %4 : vector<1x384xi1>, vector<1x384xi32>
    %c0_i32_3 = arith.constant 0 : i32
    %17 = vector.broadcast %c0_i32_3 : i32 to vector<1x384xi32>
    %18 = arith.cmpi eq, %16, %17 : vector<1x384xi32>
    %c1_i32_4 = arith.constant 1 : i32
    %19 = vector.broadcast %c1_i32_4 : i32 to vector<1x384xi32>
    %20 = arith.cmpi eq, %16, %19 : vector<1x384xi32>
    %cst = arith.constant 1.500000e-01 : f32
    %cst_5 = arith.constant 2.500000e-02 : f32
    %21 = vector.broadcast %cst : f32 to vector<1x384xf32>
    %22 = vector.broadcast %cst_5 : f32 to vector<1x384xf32>
    %23 = arith.select %20, %21, %22 : vector<1x384xi1>, vector<1x384xf32>
    %cst_6 = arith.constant 0.000000e+00 : f32
    %24 = vector.broadcast %cst_6 : f32 to vector<1x384xf32>
    %25 = arith.select %18, %24, %23 : vector<1x384xi1>, vector<1x384xf32>
    %c0 = arith.constant 0 : index
    %c0_7 = arith.constant 0 : index
    %26 = vector.load %arg1[%c0, %c0_7] : memref<88x384xf32, #tpu.memory_space<vmem>>, vector<88x384xf32>
    %27 = vector.broadcast %25 : vector<1x384xf32> to vector<88x384xf32>
    %28 = arith.addf %26, %27 : vector<88x384xf32>
    %c0_8 = arith.constant 0 : index
    %c0_9 = arith.constant 0 : index
    %29 = vector.load %arg2[%c0_8, %c0_9] : memref<88x384xf32, #tpu.memory_space<vmem>>, vector<88x384xf32>
    tpu.vector_store %arg2[%c0_8, %c0_9], %28 {strides = array<i32>} : memref<88x384xf32, #tpu.memory_space<vmem>>, vector<88x384xf32>,
    return
  }
  func.func @transform_0(%arg0: i32) -> (i32, i32) {
    %c0_i32 = arith.constant 0 : i32
    %c0_i32_0 = arith.constant 0 : i32
    return %arg0, %c0_i32 : i32, i32
  }
  func.func @transform_1(%arg0: i32) -> (i32, i32) {
    %c0_i32 = arith.constant 0 : i32
    %c0_i32_0 = arith.constant 0 : i32
    return %arg0, %c0_i32 : i32, i32
  }
}

</mosaic_0001>

<bundles_post_ra>
// kernel: tpu_custom_call.1
= control target key start
LH: loop header
LB: loop body
LE: loop exit
PB: predicated region body
PF: predicated region fallthrough
CT: control target
= control target key end

     0   :  { %6 = vsyncpa [#allocation3], 0  ;;  %s862_s0 = inlined_call_operand.hbm [shape: f32[176,384], index: 0, kind: input, shape index: {}]   ;;  %s863_s1 = inlined_call_operand.hbm [shape: f32[176,384], index: 1, kind: output, shape index: {}]  }
   0x1   :  { %8 = vsyncpa [#allocation3 + $0x1], 0 }
   0x2   :  { %9 = vsyncpa [#allocation4], 0 }
   0x3   :  { %11 = vsyncpa [#allocation4 + $0x1], 0  ;;  %s575_s6 = smov 0   ;;  %s577_s7 = smov 0  }
   0x4   :  { %s579_s8 = smov 0   ;;  %s581_s9 = smov 0  }
   0x5 LB: > { %s596_s10 = sadd.s32 4294967295, %s556_s9   ;;  %s389_s11 = sadd.s32 4294967294, %s556_s9   ;;  %s556_s9 = sphi %s581_s9, %s876_s9   ;;  %s552_s8 = sphi %s579_s8, %s875_s8   ;;  %s548_s7 = sphi %s577_s7, %s874_s7   ;;  %s544_s6 = sphi %s575_s6, %s873_s6  }
   0x6   : > { %s600_s12 = sadd.s32 1, %s556_s9   ;;  %s24_s13 = sadd.s32 1, %s552_s8 }
   0x7   : > { %s21_s14 = ssub.s32 %s556_s9, %s600_s12  ;;  %p31_p0 = scmp.ne.s32.totalorder %s552_s8, %s548_s7 }
   0x8   : > { %p22_p1 = scmp.eq.s32.totalorder %s21_s14, 0  ;;  %p32_p2 = scmp.eq.s32.totalorder %s556_s9, 0 }
   0x9   : > { %p37_p3 = scmp.ne.s32.totalorder %s548_s7, %s544_s6  ;;  %p38_p4 = scmp.eq.s32.totalorder %s596_s10, 0 }
   0xa   : > { %s612_s15 = scalar_select %p22_p1, %s552_s8, %s24_s13  }
   0xb   : > { %p33_p5 = por %p32_p2, %p31_p0  ;;  %p614_p6 = por %p38_p4, %p37_p3 }
   0xc   : > { %p61_p7 = scmp.eq.s32.totalorder %s596_s10, 1  ;;  %p67_p8 = scmp.eq.s32.totalorder %s389_s11, 1 }
   0xd   : > { %p419_p10 = scmp.lt.s32.totalorder %s556_s9, 2  ;;  %s87_s19 = sand.u32 1, %s552_s8  }
   0xe   : > { %p621_p11 = por %p61_p7, %p31_p0  ;;  %p625_p12 = por %p67_p8, %p37_p3 }
   0xf   : > { %s397_s20 = smul.u32 264, %s87_s19  ;;  %p631_p13 = pnand %p419_p10, %p33_p5 }
  0x10   : > { %s866_s17 = scalar_select %p621_p11, 1, 0 }
  0x11   : > { %s867_s18 = scalar_select %p625_p12, 1, 0 }
  0x12   : > { %s420_s21 = smul.u32 4224, %s556_s9  ;;  %s91_s26 = scalar_lea.vmem [#allocation2], %s397_s20 }
  0x13   : > { %s99_s27 = sshll.u32 %s91_s26, 4  ;;  %s643_s28 = scalar_lea.sflag [#allocation3], %s87_s19  ;;  %s640_s27 = int_to_ptr.vmem [resolvable:$true] %s99_s27 }
  0x14   : > { %s638_s25 = scalar_lea.hbm %s862_s0, %s420_s21  ;;  %p462_p2 = pneg %p631_p13 }
  0x15   : > { %s460_s29 = scalar_lea.hbm %s638_s25, 4224  ;;  %s465_s3 = scalar_lea.hbm %s862_s0, 8448 }
  0x16   : > { %p461_p1 = scmp.ne.s32.totalorder %s638_s25, %s460_s29  ;;  %p466_p5 = scmp.lt.u32.totalorder %s638_s25, %s862_s0 }
  0x17   : > { %p467_p7 = scmp.lt.u32.totalorder %s465_s3, %s460_s29  ;;  %p469_p10 = scmp.lt.u32.totalorder %s460_s29, %s638_s25 }
  0x18   : > { %p463_p3 = pnand %p462_p2, %p461_p1 }
  0x19   : > { %p468_p8 = por %p467_p7, %p466_p5 }
  0x1a   : > { %p464_p4 = pneg %p463_p3 }
  0x1b   : > { %p470_p9 = por %p469_p10, %p468_p8 }
  0x1d   : > { %p471_p0 = pnand %p470_p9, %p464_p4 }
  0x1f   : > { %474 = shalt.err (!%p471_p0)
}
  0x20   : > { %s475_s11 = scalar_lea.vmem %s640_s27, 4224  ;;  %s558_s13 = smov [#allocation2]  }
  0x21   : > { %p476_p1 = scmp.ne.s32.totalorder %s640_s27, %s475_s11  ;;  %s480_s14 = sshll.u32 %s558_s13, 4  ;;  %s481_s14 = int_to_ptr.vmem [resolvable:$false] %s480_s14 }
  0x22   : > { %s482_s19 = scalar_lea.vmem %s481_s14, 8448  ;;  %p483_p11 = scmp.lt.s32.totalorder %s640_s27, %s481_s14 }
  0x23   : > { %p478_p3 = pnand %p476_p1, %p462_p2  ;;  %p484_p5 = scmp.lt.s32.totalorder %s482_s19, %s475_s11 }
  0x25   : > { %p479_p12 = pneg %p478_p3  ;;  %p485_p7 = por %p484_p5, %p483_p11 }
  0x27   : > { %p486_p8 = pnand %p485_p7, %p479_p12 }
  0x29   : > { %489 = shalt.err (!%p486_p8)
}
  0x2a   : > { %s559_s20 = smov 384   ;;  %s560_s21 = smov 24  }
  0x2b   : > { %414 = dma.hbm_to_vmem [thread:$0]  (!%p631_p13), %s638_s25, 4224, %s640_s27, %s643_s28, %s559_s20, %s559_s20, %s560_s21  }
  0x2c   : > { %p107_p9 = scmp.lt.s32.totalorder %s556_s9, 3  ;;  %p869_p0 = scmp.ge.s32.totalorder %s556_s9, 1 }
  0x2e   : > { %p108_p2 = pnand %p869_p0, %p107_p9 }
  0x2f   : > { %s675_s23 = sand.u32 (!%p108_p2), 1, %s548_s7  }
  0x30   : > { %111 = sbr.rel (%p108_p2) target bundleno = 108 (0x6c), region = 24  ;;  %s114_s26 = scalar_lea.sflag (!%p108_p2), [#allocation3], %s675_s23 }
  0x31   : > { %s399_s24 = smul.u32 (!%p108_p2), 264, %s675_s23 }
  0x33   : > { %s681_s29 = scalar_lea.vmem (!%p108_p2), [#allocation2], %s399_s24 }
  0x37   : > { %535 = dma.done.wait (%p614_p6), %s114_s26, 4224  }
  0x38   : > { %537 = vsyncadd (%p614_p6), %s114_s26, 4294963072  ;;  %v138_v0 = vlaneseq  ;;  %v202_v21 = vld [vmem:[%s681_s29] sm:$0xff]  ;;  %v203_v23 = vld [vmem:[%s681_s29 + $0x8] sm:$0xff]  ;;  %v561_v26 = vmov 0.025   ;;  %s726_s16 = scalar_lea.vmem [#allocation5], %s399_s24 }
  0x39   : > { %v205_v24 = vld [vmem:[%s681_s29 + $0x18] sm:$0xff]  ;;  %v206_v25 = vld [vmem:[%s681_s29 + $0x20] sm:$0xff]  ;;  %v208_v30 = vld [vmem:[%s681_s29 + $0x30] sm:$0xff]  ;;  %s421_s22 = smul.u32 4224, %s596_s10  ;;  %s316_s25 = sshll.u32 %s726_s16, 4  ;;  %s795_s25 = int_to_ptr.vmem [resolvable:$true] %s316_s25 }
  0x3a   : > { %v139_v1 = vand.u32 127, %v138_v0  ;;  %v209_v31 = vld [vmem:[%s681_s29 + $0x38] sm:$0xff]  ;;  %v204_v33 = vld [vmem:[%s681_s29 + $0x10] sm:$0xff]  ;;  %v207_v34 = vld [vmem:[%s681_s29 + $0x28] sm:$0xff]  ;;  %s302_s2 = scalar_lea.sflag [#allocation4], %s675_s23  ;;  %s490_s3 = scalar_lea.vmem %s795_s25, 4224 }
  0x3b   : > { %v210_v35 = vld [vmem:[%s681_s29 + $0x40] sm:$0xff]  ;;  %v211_v36 = vld [vmem:[%s681_s29 + $0x48] sm:$0xff]  ;;  %v212_v37 = vld [vmem:[%s681_s29 + $0x50] sm:$0xff]  ;;  %s810_s30 = scalar_lea.hbm %s863_s1, %s421_s22  ;;  %p491_p6 = scmp.ne.s32.totalorder %s795_s25, %s490_s3 }
  0x3c   : > { %v687_v2 = vmul.u32.u64.low 2863311531, %v139_v1  ;;  %v688_v3 = vmul.u32.u64.high 2863311531, %v139_v1, %v687_v2  ;;  %v140_v4 = vadd.s32 128, %v139_v1  ;;  %v141_v5 = vadd.s32 256, %v139_v1  ;;  %v213_v38 = vld [vmem:[%s681_s29 + $0x58] sm:$0xff]  ;;  %v214_v43 = vld [vmem:[%s681_s29 + $0x60] sm:$0xff] }
  0x3d   : > { %v215_v44 = vld [vmem:[%s681_s29 + $0x68] sm:$0xff]  ;;  %v216_v45 = vld [vmem:[%s681_s29 + $0x70] sm:$0xff]  ;;  %v217_v48 = vld [vmem:[%s681_s29 + $0x78] sm:$0xff]  ;;  %p870_p11 = scmp.ne.s32.totalorder %s866_s17, 0  ;;  %s562_s10 = smov [#allocation5]  }
  0x3e   : > { %v690_v6 = vmul.u32.u64.low 2863311531, %v140_v4  ;;  %v691_v7 = vmul.u32.u64.high 2863311531, %v140_v4, %v690_v6  ;;  %v693_v8 = vmul.u32.u64.low 2863311531, %v141_v5  ;;  %v694_v9 = vmul.u32.u64.high 2863311531, %v141_v5, %v693_v8  ;;  %v218_v49 = vld [vmem:[%s681_s29 + $0x80] sm:$0xff]  ;;  %v219_v50 = vld [vmem:[%s681_s29 + $0x88] sm:$0xff] }
  0x3f   : > { %v148_v10 = vshrl.u32 %v688_v3, 1  ;;  %v220_v55 = vld [vmem:[%s681_s29 + $0x90] sm:$0xff]  ;;  %v221_v56 = vld [vmem:[%s681_s29 + $0x98] sm:$0xff]  ;;  %v222_v57 = vld [vmem:[%s681_s29 + $0xa0] sm:$0xff]  ;;  %p492_p12 = pnand %p491_p6, %p870_p11  ;;  %s494_s4 = sshll.u32 %s562_s10, 4  ;;  %s495_s4 = int_to_ptr.vmem [resolvable:$false] %s494_s4 }
  0x40   : > { %v159_v12 = vshrl.u32 %v691_v7, 1  ;;  %v170_v13 = vshrl.u32 %v694_v9, 1  ;;  %v223_v62 = vld [vmem:[%s681_s29 + $0xa8] sm:$0xff]  ;;  %v224_v63 = vld [vmem:[%s681_s29 + $0xb0] sm:$0xff]  ;;  %v225_v0 = vld [vmem:[%s681_s29 + $0xb8] sm:$0xff]  ;;  %s496_s5 = scalar_lea.vmem %s495_s4, 8448  ;;  %p497_p4 = scmp.lt.s32.totalorder %s795_s25, %s495_s4 }
  0x41   : > { %v149_v11 = vmul.u32 3, %v148_v10  ;;  %v227_v6 = vld [vmem:[%s681_s29 + $0xc8] sm:$0xff]  ;;  %v228_v7 = vld [vmem:[%s681_s29 + $0xd0] sm:$0xff]  ;;  %p493_p13 = pneg %p492_p12  ;;  %p498_p10 = scmp.lt.s32.totalorder %s496_s5, %s490_s3 }
  0x42   : > { %v160_v15 = vmul.u32 3, %v159_v12  ;;  %v171_v16 = vmul.u32 3, %v170_v13  ;;  %v229_v12 = vld [vmem:[%s681_s29 + $0xd8] sm:$0xff]  ;;  %v230_v13 = vld [vmem:[%s681_s29 + $0xe0] sm:$0xff] }
  0x43   : > { %v150_v14 = vsub.s32 %v139_v1, %v149_v11  ;;  %p499_p1 = por %p498_p10, %p497_p4 }
  0x44   : > { %v161_v18 = vsub.s32 %v140_v4, %v160_v15  ;;  %v172_v19 = vsub.s32 %v141_v5, %v171_v16  ;;  %v226_v5 = vld [vmem:[%s681_s29 + $0xc0] sm:$0xff] }
  0x45   : > { %vm175_vm0 = vcmp.ne.s32.totalorder %v150_v14, 0  ;;  %vm178_vm1 = vcmp.lt.s32.totalorder %v150_v14, 0  ;;  %v184_v17 = vadd.s32 3, %v150_v14  ;;  %p500_p3 = pnand %p499_p1, %p493_p13 }
  0x46   : > { %vm181_vm2 = vmand %vm178_vm1, %vm175_vm0  ;;  %vm176_vm3 = vcmp.ne.s32.totalorder %v161_v18, 0  ;;  %vm179_vm4 = vcmp.lt.s32.totalorder %v161_v18, 0  ;;  %v185_v22 = vadd.s32 3, %v161_v18  ;;  %vm177_vm8 = vcmp.ne.s32.totalorder %v172_v19, 0 }
  0x47   : > { %v187_v20 = vsel %vm181_vm2, %v184_v17, %v150_v14  ;;  %vm182_vm7 = vmand %vm179_vm4, %vm176_vm3  ;;  %vm180_vm9 = vcmp.lt.s32.totalorder %v172_v19, 0  ;;  %v186_v29 = vadd.s32 3, %v172_v19  ;;  %v231_v14 = vld [vmem:[%s681_s29 + $0xe8] sm:$0xff] }
  0x48   : > { %vm190_vm5 = vcmp.eq.s32.totalorder %v187_v20, 0  ;;  %vm193_vm6 = vcmp.eq.s32.totalorder %v187_v20, 1  ;;  %v188_v28 = vsel %vm182_vm7, %v185_v22, %v161_v18  ;;  %vm183_vm10 = vmand %vm180_vm9, %vm177_vm8  ;;  %v233_v20 = vld [vmem:[%s681_s29 + $0xf8] sm:$0xff] }
  0x49   : > { %v196_v27 = vsel %vm193_vm6, 0.15, %v561_v26  ;;  %vm191_vm11 = vcmp.eq.s32.totalorder %v188_v28, 0  ;;  %vm194_vm12 = vcmp.eq.s32.totalorder %v188_v28, 1  ;;  %v189_v41 = vsel %vm183_vm10, %v186_v29, %v172_v19  ;;  %v232_v19 = vld [vmem:[%s681_s29 + $0xf0] sm:$0xff] }
  0x4a   : > { %v705_v32 = vsel %vm190_vm5, 0.0, %v196_v27  ;;  %v197_v40 = vsel %vm194_vm12, 0.15, %v561_v26  ;;  %vm192_vm13 = vcmp.eq.s32.totalorder %v189_v41, 0  ;;  %vm195_vm14 = vcmp.eq.s32.totalorder %v189_v41, 1 }
  0x4b   : > { %v235_v39 = vadd.f32 %v202_v21, %v705_v32  ;;  %v238_v42 = vadd.f32 %v205_v24, %v705_v32  ;;  %v718_v46 = vsel %vm191_vm11, 0.0, %v197_v40  ;;  %v241_v47 = vadd.f32 %v208_v30, %v705_v32  ;;  %v234_v21 = vld [vmem:[%s681_s29 + $0x100] sm:$0xff] }
  0x4c   : > { %v236_v51 = vadd.f32 %v203_v23, %v718_v46  ;;  %v198_v52 = vsel %vm195_vm14, 0.15, %v561_v26  ;;  %v239_v53 = vadd.f32 %v206_v25, %v718_v46  ;;  %v242_v54 = vadd.f32 %v209_v31, %v718_v46 }
  0x4d   : > { %268 = vst [vmem:[%s726_s16] sm:$0xff] %v235_v39  ;;  %271 = vst [vmem:[%s726_s16 + $0x18] sm:$0xff] %v238_v42  ;;  %v737_v58 = vsel %vm192_vm13, 0.0, %v198_v52  ;;  %v244_v59 = vadd.f32 %v211_v36, %v705_v32  ;;  %v245_v60 = vadd.f32 %v212_v37, %v718_v46  ;;  %v247_v61 = vadd.f32 %v214_v43, %v705_v32 }
  0x4e   : > { %274 = vst [vmem:[%s726_s16 + $0x30] sm:$0xff] %v241_v47  ;;  %269 = vst [vmem:[%s726_s16 + $0x8] sm:$0xff] %v236_v51  ;;  %v237_v1 = vadd.f32 %v204_v33, %v737_v58  ;;  %v240_v2 = vadd.f32 %v207_v34, %v737_v58  ;;  %v243_v3 = vadd.f32 %v210_v35, %v737_v58 }
  0x4f   : > { %272 = vst [vmem:[%s726_s16 + $0x20] sm:$0xff] %v239_v53  ;;  %275 = vst [vmem:[%s726_s16 + $0x38] sm:$0xff] %v242_v54  ;;  %v246_v4 = vadd.f32 %v213_v38, %v737_v58  ;;  %v248_v8 = vadd.f32 %v215_v44, %v718_v46  ;;  %v249_v9 = vadd.f32 %v216_v45, %v737_v58 }
  0x50   : > { %277 = vst [vmem:[%s726_s16 + $0x48] sm:$0xff] %v244_v59  ;;  %278 = vst [vmem:[%s726_s16 + $0x50] sm:$0xff] %v245_v60  ;;  %v250_v10 = vadd.f32 %v217_v48, %v705_v32  ;;  %v251_v11 = vadd.f32 %v218_v49, %v718_v46  ;;  %v252_v15 = vadd.f32 %v219_v50, %v737_v58 }
  0x51   : > { %280 = vst [vmem:[%s726_s16 + $0x60] sm:$0xff] %v247_v61  ;;  %270 = vst [vmem:[%s726_s16 + $0x10] sm:$0xff] %v237_v1  ;;  %v253_v16 = vadd.f32 %v220_v55, %v705_v32  ;;  %v254_v17 = vadd.f32 %v221_v56, %v718_v46  ;;  %v255_v18 = vadd.f32 %v222_v57, %v737_v58 }
  0x52   : > { %273 = vst [vmem:[%s726_s16 + $0x28] sm:$0xff] %v240_v2  ;;  %276 = vst [vmem:[%s726_s16 + $0x40] sm:$0xff] %v243_v3  ;;  %v256_v22 = vadd.f32 %v223_v62, %v705_v32  ;;  %v257_v23 = vadd.f32 %v224_v63, %v718_v46  ;;  %v258_v24 = vadd.f32 %v225_v0, %v737_v58 }
  0x53   : > { %279 = vst [vmem:[%s726_s16 + $0x58] sm:$0xff] %v246_v4  ;;  %281 = vst [vmem:[%s726_s16 + $0x68] sm:$0xff] %v248_v8  ;;  %v259_v25 = vadd.f32 %v226_v5, %v705_v32  ;;  %v260_v26 = vadd.f32 %v227_v6, %v718_v46  ;;  %v261_v27 = vadd.f32 %v228_v7, %v737_v58 }
  0x54   : > { %282 = vst [vmem:[%s726_s16 + $0x70] sm:$0xff] %v249_v9  ;;  %283 = vst [vmem:[%s726_s16 + $0x78] sm:$0xff] %v250_v10  ;;  %v262_v28 = vadd.f32 %v229_v12, %v705_v32  ;;  %v263_v29 = vadd.f32 %v230_v13, %v718_v46  ;;  %v264_v30 = vadd.f32 %v231_v14, %v737_v58 }
  0x55   : > { %284 = vst [vmem:[%s726_s16 + $0x80] sm:$0xff] %v251_v11  ;;  %285 = vst [vmem:[%s726_s16 + $0x88] sm:$0xff] %v252_v15  ;;  %v265_v31 = vadd.f32 %v232_v19, %v705_v32  ;;  %v266_v33 = vadd.f32 %v233_v20, %v718_v46  ;;  %v267_v34 = vadd.f32 %v234_v21, %v737_v58 }
  0x56   : > { %286 = vst [vmem:[%s726_s16 + $0x90] sm:$0xff] %v253_v16  ;;  %287 = vst [vmem:[%s726_s16 + $0x98] sm:$0xff] %v254_v17 }
  0x57   : > { %288 = vst [vmem:[%s726_s16 + $0xa0] sm:$0xff] %v255_v18  ;;  %289 = vst [vmem:[%s726_s16 + $0xa8] sm:$0xff] %v256_v22 }
  0x58   : > { %290 = vst [vmem:[%s726_s16 + $0xb0] sm:$0xff] %v257_v23  ;;  %291 = vst [vmem:[%s726_s16 + $0xb8] sm:$0xff] %v258_v24 }
  0x59   : > { %292 = vst [vmem:[%s726_s16 + $0xc0] sm:$0xff] %v259_v25  ;;  %293 = vst [vmem:[%s726_s16 + $0xc8] sm:$0xff] %v260_v26 }
  0x5a   : > { %294 = vst [vmem:[%s726_s16 + $0xd0] sm:$0xff] %v261_v27  ;;  %295 = vst [vmem:[%s726_s16 + $0xd8] sm:$0xff] %v262_v28 }
  0x5b   : > { %296 = vst [vmem:[%s726_s16 + $0xe0] sm:$0xff] %v263_v29  ;;  %297 = vst [vmem:[%s726_s16 + $0xe8] sm:$0xff] %v264_v30 }
  0x5c   : > { %298 = vst [vmem:[%s726_s16 + $0xf0] sm:$0xff] %v265_v31  ;;  %299 = vst [vmem:[%s726_s16 + $0xf8] sm:$0xff] %v266_v33 }
  0x5d   : > { %300 = vst [vmem:[%s726_s16 + $0x100] sm:$0xff] %v267_v34 }
  0x5e   : > { %503 = shalt.err (!%p500_p3)
}
  0x5f   : > { %s504_s11 = scalar_lea.hbm %s810_s30, 4224  ;;  %s508_s19 = scalar_lea.hbm %s863_s1, 8448 }
  0x60   : > { %p505_p5 = scmp.ne.s32.totalorder %s810_s30, %s504_s11  ;;  %p509_p9 = scmp.lt.u32.totalorder %s810_s30, %s863_s1 }
  0x61   : > { %p510_p0 = scmp.lt.u32.totalorder %s508_s19, %s504_s11  ;;  %p512_p6 = scmp.lt.u32.totalorder %s504_s11, %s810_s30 }
  0x62   : > { %p506_p7 = pnand %p505_p5, %p870_p11 }
  0x63   : > { %p511_p2 = por %p510_p0, %p509_p9 }
  0x64   : > { %p507_p8 = pneg %p506_p7 }
  0x65   : > { %p513_p12 = por %p512_p6, %p511_p2 }
  0x67   : > { %p514_p13 = pnand %p513_p12, %p507_p8 }
  0x69   : > { %517 = shalt.err (!%p514_p13)
}
  0x6a   : > { %s563_s24 = smov 384   ;;  %s564_s26 = smov 24  }
  0x6b   : > { %409 = dma.vmem_to_hbm [thread:$0]  (%p870_p11), %s795_s25, 4224, %s810_s30, %s302_s2, %s563_s24, %s563_s24, %s564_s26  }
  0x6c PF: > { %s331_s29 = sand.u32 1, %s544_s6   ;;  %p871_p4 = scmp.ne.s32.totalorder %s867_s18, 0 }
  0x6d   : > { %p872_p10 = scmp.ge.s32.totalorder %s556_s9, 2  ;;  %s332_s16 = scalar_lea.sflag [#allocation4], %s331_s29 }
  0x6f   : > { %p416_p1 = pnand %p872_p10, %p871_p4 }
  0x71   : > { %539 = dma.done.wait (!%p416_p1), %s332_s16, 4224  }
  0x72   : > { %541 = vsyncadd (!%p416_p1), %s332_s16, 4294963072  ;;  %p14_p3 = scmp.ge.s32.totalorder %s600_s12, 4   ;;  %s873_s6 = smov %s548_s7 }
  0x73   : > { %s874_s7 = smov %s552_s8  ;;  %s875_s8 = smov %s612_s15 }
  0x74   : > { %s876_s9 = smov %s600_s12  ;;  %16 = sbr.rel (!%p14_p3) target bundleno = 5 (0x5), region = 69 }
  0x7b   :  { %337 = vsyncpa [#allocation3], 1 }
  0x7c   :  { %339 = vsyncpa [#allocation3 + $0x1], 1 }
  0x7d   :  { %340 = vsyncpa [#allocation4], 1 }
  0x7e   :  { %342 = vsyncpa [#allocation4 + $0x1], 1 }

</bundles_post_ra>
